<compile_context>
chip_gen: v5e
topology: v5e:2x2
jax: 0.10.0
libtpu: 0.0.40
codegen_flags: <defaults>
</compile_context>

<pallas_src>
import jax
import jax.numpy as jnp
from jax.experimental import pallas as pl
from jax.experimental.pallas import tpu as pltpu

_LANE = 128
# Per-operand block cap: 3 operands x 2 pipeline buffers x 2 MiB = 12 MiB,
# safe under v5e's 16 MiB scoped-VMEM default and v7x's smaller VMEM.
_MAX_BLOCK_BYTES = 2 * 1024 * 1024


def _add_kernel(a_ref, b_ref, o_ref):
    # Single vreg-streaming VPU add; the kernel is HBM-DMA bound, so no extra
    # work, slices or scratch in the body.
    o_ref[...] = a_ref[...] + b_ref[...]


def _is_v7x() -> bool:
    """Best-effort detection of a 2-TensorCore-per-chip TPU (v7x)."""
    try:
        kind = jax.devices()[0].device_kind.lower()
    except Exception:
        return False
    return ("v7" in kind) or ("7x" in kind)


def _plan_lane_dense(n_elems, itemsize, *, min_grid=1, max_rows=64,
                     max_block_bytes=_MAX_BLOCK_BYTES):
    """Plan a lane-dense (rows, cols) slab and a 1-D grid over the cols axis.

    Requires n_elems % _LANE == 0. Returns (rows, cols, grid, block_cols);
    cols and block_cols are multiples of _LANE and rows * cols == n_elems.
    """
    assert n_elems % _LANE == 0
    total_lanes = n_elems // _LANE

    # rows: largest divisor of total_lanes <= max_rows -> widest possible cols.
    rows = 1
    for d in range(2, max_rows + 1):
        if total_lanes % d == 0:
            rows = d
    cols_lanes = total_lanes // rows
    cols = cols_lanes * _LANE

    operand_bytes = n_elems * itemsize
    # Small tensor on a single-TC chip: one full-slab block, no grid stepping.
    if min_grid <= 1 and operand_bytes <= max_block_bytes:
        return rows, cols, 1, cols

    # Otherwise pick the SMALLEST divisor of cols_lanes that (a) keeps the
    # per-operand block under the cap and (b) is >= min_grid (even 2-way
    # split on v7x).  Smallest such divisor == biggest block that fits.
    divisors = [d for d in range(1, cols_lanes + 1) if cols_lanes % d == 0]
    grid = divisors[-1]  # worst case: 128-lane-wide blocks, always VMEM-safe
    for g in divisors:
        if g < min_grid:
            continue
        if rows * (cols // g) * itemsize <= max_block_bytes:
            grid = g
            break
    block_cols = cols // grid
    return rows, cols, grid, block_cols


def _lane_dense_add(a2d, b2d, rows, cols, grid, block_cols, *, v7x):
    out_shape = jax.ShapeDtypeStruct((rows, cols), a2d.dtype)

    if grid == 1:
        # Single full-extent block resident in VMEM: long unmasked vld/vst
        # runs, zero grid-step overhead.
        return pl.pallas_call(_add_kernel, out_shape=out_shape)(a2d, b2d)

    # On v7x, a 2-step grid tagged CORE_PARALLEL puts one block on each
    # TensorCore (HBM bandwidth is per-TC -> ~2x for this mem-bound add).
    if v7x and grid == 2:
        sem = pltpu.CORE_PARALLEL
    else:
        sem = "parallel"
    return pl.pallas_call(
        _add_kernel,
        out_shape=out_shape,
        grid=(grid,),
        in_specs=[
            pl.BlockSpec((rows, block_cols), lambda i: (0, i)),
            pl.BlockSpec((rows, block_cols), lambda i: (0, i)),
        ],
        out_specs=pl.BlockSpec((rows, block_cols), lambda i: (0, i)),
        compiler_params=pltpu.CompilerParams(dimension_semantics=(sem,)),
    )(a2d, b2d)


def pallas_add(x23: jax.Array, x37: jax.Array) -> jax.Array:
    assert x23.shape == x37.shape and x23.dtype == x37.dtype
    orig_shape = x23.shape
    n = x23.size
    itemsize = x23.dtype.itemsize
    v7x = _is_v7x()
    min_grid = 2 if v7x else 1

    if n % _LANE == 0:
        rows, cols, grid, block_cols = _plan_lane_dense(
            n, itemsize, min_grid=min_grid)
        out2d = _lane_dense_add(
            x23.reshape(rows, cols), x37.reshape(rows, cols),
            rows, cols, grid, block_cols, v7x=v7x)
        return out2d.reshape(orig_shape)

    # Fallback (not hit for [1,144,28,28]): element count not divisible by
    # 128.  Process the lane-aligned majority as a wide lane-dense slab and
    # the < 128 element remainder as one tiny full-extent block, then concat.
    a_flat = x23.reshape(-1)
    b_flat = x37.reshape(-1)
    n_main = (n // _LANE) * _LANE
    parts = []
    if n_main:
        rows, cols, grid, block_cols = _plan_lane_dense(
            n_main, itemsize, min_grid=min_grid)
        main = _lane_dense_add(
            a_flat[:n_main].reshape(rows, cols),
            b_flat[:n_main].reshape(rows, cols),
            rows, cols, grid, block_cols, v7x=v7x)
        parts.append(main.reshape(-1))
    rem = n - n_main
    if rem:
        tail = pl.pallas_call(
            _add_kernel,
            out_shape=jax.ShapeDtypeStruct((1, rem), x23.dtype),
        )(a_flat[n_main:].reshape(1, rem), b_flat[n_main:].reshape(1, rem))
        parts.append(tail.reshape(-1))
    out = parts[0] if len(parts) == 1 else jnp.concatenate(parts)
    return out.reshape(orig_shape)


if __name__ == "__main__":
    key = jax.random.PRNGKey(0)
    k1, k2 = jax.random.split(key)
    # Shape from the PyTorch module: torch.Size([1, 144, 28, 28])
    shape = (1, 144, 28, 28)
    x23 = jax.random.normal(k1, shape, dtype=jnp.float32)
    x37 = jax.random.normal(k2, shape, dtype=jnp.float32)

    out = pallas_add(x23, x37)
    jax.block_until_ready(out)

    # Correctness check against plain JAX reference.
    ref = x23 + x37
    assert out.shape == ref.shape and out.dtype == ref.dtype
    assert jnp.allclose(out, ref, atol=1e-6, rtol=1e-6)
    print("KERNEL_OK")
</pallas_src>

<mosaic_0001>
module attributes {stable_mosaic.version = 11 : i64} {
  func.func @_add_kernel(%arg0: memref<63x1792xf32, #tpu.memory_space<vmem>>, %arg1: memref<63x1792xf32, #tpu.memory_space<vmem>>, %arg2: memref<63x1792xf32, #tpu.memory_space<vmem>>) attributes {dimension_semantics = [], scalar_prefetch = 0 : i64, scratch_operands = 0 : i64, tpu.core_type = #tpu.core_type<tc>} {
    %c0 = arith.constant 0 : index
    %c0_0 = arith.constant 0 : index
    %0 = vector.load %arg0[%c0, %c0_0] : memref<63x1792xf32, #tpu.memory_space<vmem>>, vector<63x1792xf32>
    %c0_1 = arith.constant 0 : index
    %c0_2 = arith.constant 0 : index
    %1 = vector.load %arg1[%c0_1, %c0_2] : memref<63x1792xf32, #tpu.memory_space<vmem>>, vector<63x1792xf32>
    %2 = arith.addf %0, %1 : vector<63x1792xf32>
    %c0_3 = arith.constant 0 : index
    %c0_4 = arith.constant 0 : index
    %3 = vector.load %arg2[%c0_3, %c0_4] : memref<63x1792xf32, #tpu.memory_space<vmem>>, vector<63x1792xf32>
    tpu.vector_store %arg2[%c0_3, %c0_4], %2 {strides = array<i32>} : memref<63x1792xf32, #tpu.memory_space<vmem>>, vector<63x1792xf32>,
    return
  }
}

</mosaic_0001>

<bundles_post_ra>
// kernel: tpu_custom_call.1
= control target key start
LH: loop header
LB: loop body
LE: loop exit
PB: predicated region body
PF: predicated region fallthrough
CT: control target
= control target key end

     0   :  { %7 = vsyncpa [#allocation3], 0  ;;  %s633_s0 = inlined_call_operand.hbm [shape: f32[63,1792], index: 0, kind: input, shape index: {}]   ;;  %s634_s1 = inlined_call_operand.hbm [shape: f32[63,1792], index: 1, kind: input, shape index: {}]   ;;  %s635_s2 = inlined_call_operand.hbm [shape: f32[63,1792], index: 2, kind: output, shape index: {}]  }
   0x1   :  { %8 = vsyncpa [#allocation6], 0 }
   0x2   :  { %9 = vsyncpa [#allocation4], 0  ;;  %s14_s11 = sshll.u32 %s633_s0, 4  ;;  %s595_s12 = smov [#allocation2]   ;;  %s15_s11 = int_to_ptr.hbm [resolvable:$true] %s14_s11 }
   0x3   :  { %s16_s13 = sshll.u32 %s595_s12, 4  ;;  %s27_s16 = sshll.u32 %s634_s1, 4  ;;  %s17_s13 = int_to_ptr.vmem [resolvable:$true] %s16_s13  ;;  %s28_s16 = int_to_ptr.hbm [resolvable:$true] %s27_s16 }
   0x4   :  { %s596_s17 = smov 1792   ;;  %s597_s18 = smov 112  }
   0x5   :  { %22 = dma.hbm_to_vmem [thread:$0]  %s15_s11, 14336, %s17_s13, [#allocation3], %s596_s17, %s596_s17, %s597_s18  }
   0x6   :  { %s598_s19 = smov [#allocation5]  }
   0x7   :  { %s29_s20 = sshll.u32 %s598_s19, 4  ;;  %s30_s20 = int_to_ptr.vmem [resolvable:$true] %s29_s20 }
   0x8   :  { %35 = dma.hbm_to_vmem [thread:$0]  %s28_s16, 14336, %s30_s20, [#allocation6], %s596_s17, %s596_s17, %s597_s18  }
   0x9   :  { %589 = dma.done.wait [#allocation3], 14336  }
   0xa   :  { %590 = vsyncadd [#allocation3], 4294952960 }
   0xb   :  { %591 = dma.done.wait [#allocation6], 14336  }
   0xc   :  { %592 = vsyncadd [#allocation6], 4294952960  ;;  %v44_v0 = vld [vmem:[#allocation2] sm:$0xff]  ;;  %v45_v2 = vld [vmem:[#allocation2 + $0x8] sm:$0xff]  ;;  %s599_s0 = smov [#allocation7]   ;;  %s498_s23 = sshll.u32 %s635_s2, 4  ;;  %s499_s23 = int_to_ptr.hbm [resolvable:$true] %s498_s23 }
   0xd   :  { %v156_v1 = vld [vmem:[#allocation5] sm:$0xff]  ;;  %v157_v4 = vld [vmem:[#allocation5 + $0x8] sm:$0xff]  ;;  %v46_v5 = vld [vmem:[#allocation2 + $0x10] sm:$0xff]  ;;  %s496_s1 = sshll.u32 %s599_s0, 4  ;;  %s497_s1 = int_to_ptr.vmem [resolvable:$true] %s496_s1 }
   0xe   :  { %v268_v3 = vadd.f32 %v156_v1, %v44_v0  ;;  %v158_v6 = vld [vmem:[#allocation5 + $0x10] sm:$0xff]  ;;  %v269_v7 = vadd.f32 %v157_v4, %v45_v2  ;;  %v47_v9 = vld [vmem:[#allocation2 + $0x18] sm:$0xff]  ;;  %v48_v11 = vld [vmem:[#allocation2 + $0x20] sm:$0xff] }
   0xf   :  { %v270_v8 = vadd.f32 %v158_v6, %v46_v5  ;;  %v159_v10 = vld [vmem:[#allocation5 + $0x18] sm:$0xff]  ;;  %v160_v13 = vld [vmem:[#allocation5 + $0x20] sm:$0xff]  ;;  %v49_v14 = vld [vmem:[#allocation2 + $0x28] sm:$0xff] }
  0x10   :  { %380 = vst [vmem:[#allocation7] sm:$0xff] %v268_v3  ;;  %v271_v12 = vadd.f32 %v159_v10, %v47_v9  ;;  %v161_v15 = vld [vmem:[#allocation5 + $0x28] sm:$0xff]  ;;  %v272_v16 = vadd.f32 %v160_v13, %v48_v11  ;;  %v50_v18 = vld [vmem:[#allocation2 + $0x30] sm:$0xff]  ;;  %v51_v20 = vld [vmem:[#allocation2 + $0x38] sm:$0xff] }
  0x11   :  { %381 = vst [vmem:[#allocation7 + $0x8] sm:$0xff] %v269_v7  ;;  %v273_v17 = vadd.f32 %v161_v15, %v49_v14  ;;  %v162_v19 = vld [vmem:[#allocation5 + $0x30] sm:$0xff]  ;;  %v163_v22 = vld [vmem:[#allocation5 + $0x38] sm:$0xff]  ;;  %v52_v23 = vld [vmem:[#allocation2 + $0x40] sm:$0xff] }
  0x12   :  { %382 = vst [vmem:[#allocation7 + $0x10] sm:$0xff] %v270_v8  ;;  %v274_v21 = vadd.f32 %v162_v19, %v50_v18  ;;  %v164_v24 = vld [vmem:[#allocation5 + $0x40] sm:$0xff]  ;;  %v275_v25 = vadd.f32 %v163_v22, %v51_v20  ;;  %v53_v26 = vld [vmem:[#allocation2 + $0x48] sm:$0xff]  ;;  %v54_v28 = vld [vmem:[#allocation2 + $0x50] sm:$0xff] }
  0x13   :  { %383 = vst [vmem:[#allocation7 + $0x18] sm:$0xff] %v271_v12  ;;  %v165_v27 = vld [vmem:[#allocation5 + $0x48] sm:$0xff]  ;;  %v276_v29 = vadd.f32 %v164_v24, %v52_v23  ;;  %v166_v30 = vld [vmem:[#allocation5 + $0x50] sm:$0xff]  ;;  %v55_v31 = vld [vmem:[#allocation2 + $0x58] sm:$0xff] }
  0x14   :  { %384 = vst [vmem:[#allocation7 + $0x20] sm:$0xff] %v272_v16  ;;  %v167_v32 = vld [vmem:[#allocation5 + $0x58] sm:$0xff]  ;;  %v277_v33 = vadd.f32 %v165_v27, %v53_v26  ;;  %v56_v34 = vld [vmem:[#allocation2 + $0x60] sm:$0xff]  ;;  %v278_v36 = vadd.f32 %v166_v30, %v54_v28  ;;  %v57_v37 = vld [vmem:[#allocation2 + $0x68] sm:$0xff] }
  0x15   :  { %385 = vst [vmem:[#allocation7 + $0x28] sm:$0xff] %v273_v17  ;;  %v168_v35 = vld [vmem:[#allocation5 + $0x60] sm:$0xff]  ;;  %v169_v38 = vld [vmem:[#allocation5 + $0x68] sm:$0xff]  ;;  %v279_v39 = vadd.f32 %v167_v32, %v55_v31  ;;  %v58_v40 = vld [vmem:[#allocation2 + $0x70] sm:$0xff] }
  0x16   :  { %386 = vst [vmem:[#allocation7 + $0x30] sm:$0xff] %v274_v21  ;;  %v170_v41 = vld [vmem:[#allocation5 + $0x70] sm:$0xff]  ;;  %v280_v42 = vadd.f32 %v168_v35, %v56_v34  ;;  %v59_v43 = vld [vmem:[#allocation2 + $0x78] sm:$0xff]  ;;  %v281_v45 = vadd.f32 %v169_v38, %v57_v37  ;;  %v60_v46 = vld [vmem:[#allocation2 + $0x80] sm:$0xff] }
  0x17   :  { %387 = vst [vmem:[#allocation7 + $0x38] sm:$0xff] %v275_v25  ;;  %v171_v44 = vld [vmem:[#allocation5 + $0x78] sm:$0xff]  ;;  %v172_v47 = vld [vmem:[#allocation5 + $0x80] sm:$0xff]  ;;  %v282_v48 = vadd.f32 %v170_v41, %v58_v40  ;;  %v61_v49 = vld [vmem:[#allocation2 + $0x88] sm:$0xff] }
  0x18   :  { %388 = vst [vmem:[#allocation7 + $0x40] sm:$0xff] %v276_v29  ;;  %v173_v50 = vld [vmem:[#allocation5 + $0x88] sm:$0xff]  ;;  %v283_v51 = vadd.f32 %v171_v44, %v59_v43  ;;  %v62_v52 = vld [vmem:[#allocation2 + $0x90] sm:$0xff]  ;;  %v284_v54 = vadd.f32 %v172_v47, %v60_v46  ;;  %v63_v55 = vld [vmem:[#allocation2 + $0x98] sm:$0xff] }
  0x19   :  { %389 = vst [vmem:[#allocation7 + $0x48] sm:$0xff] %v277_v33  ;;  %v174_v53 = vld [vmem:[#allocation5 + $0x90] sm:$0xff]  ;;  %v175_v56 = vld [vmem:[#allocation5 + $0x98] sm:$0xff]  ;;  %v285_v57 = vadd.f32 %v173_v50, %v61_v49  ;;  %v64_v58 = vld [vmem:[#allocation2 + $0xa0] sm:$0xff] }
  0x1a   :  { %390 = vst [vmem:[#allocation7 + $0x50] sm:$0xff] %v278_v36  ;;  %v176_v59 = vld [vmem:[#allocation5 + $0xa0] sm:$0xff]  ;;  %v286_v60 = vadd.f32 %v174_v53, %v62_v52  ;;  %v65_v61 = vld [vmem:[#allocation2 + $0xa8] sm:$0xff]  ;;  %v287_v63 = vadd.f32 %v175_v56, %v63_v55  ;;  %v66_v0 = vld [vmem:[#allocation2 + $0xb0] sm:$0xff] }
  0x1b   :  { %391 = vst [vmem:[#allocation7 + $0x58] sm:$0xff] %v279_v39  ;;  %v177_v62 = vld [vmem:[#allocation5 + $0xa8] sm:$0xff]  ;;  %v178_v1 = vld [vmem:[#allocation5 + $0xb0] sm:$0xff]  ;;  %v288_v2 = vadd.f32 %v176_v59, %v64_v58  ;;  %v67_v3 = vld [vmem:[#allocation2 + $0xb8] sm:$0xff] }
  0x1c   :  { %392 = vst [vmem:[#allocation7 + $0x60] sm:$0xff] %v280_v42  ;;  %v179_v4 = vld [vmem:[#allocation5 + $0xb8] sm:$0xff]  ;;  %v289_v5 = vadd.f32 %v177_v62, %v65_v61  ;;  %v68_v6 = vld [vmem:[#allocation2 + $0xc0] sm:$0xff]  ;;  %v290_v8 = vadd.f32 %v178_v1, %v66_v0  ;;  %v69_v9 = vld [vmem:[#allocation2 + $0xc8] sm:$0xff] }
  0x1d   :  { %393 = vst [vmem:[#allocation7 + $0x68] sm:$0xff] %v281_v45  ;;  %v180_v7 = vld [vmem:[#allocation5 + $0xc0] sm:$0xff]  ;;  %v181_v10 = vld [vmem:[#allocation5 + $0xc8] sm:$0xff]  ;;  %v291_v11 = vadd.f32 %v179_v4, %v67_v3  ;;  %v70_v12 = vld [vmem:[#allocation2 + $0xd0] sm:$0xff] }
  0x1e   :  { %394 = vst [vmem:[#allocation7 + $0x70] sm:$0xff] %v282_v48  ;;  %v182_v13 = vld [vmem:[#allocation5 + $0xd0] sm:$0xff]  ;;  %v292_v14 = vadd.f32 %v180_v7, %v68_v6  ;;  %v71_v15 = vld [vmem:[#allocation2 + $0xd8] sm:$0xff]  ;;  %v293_v17 = vadd.f32 %v181_v10, %v69_v9  ;;  %v72_v18 = vld [vmem:[#allocation2 + $0xe0] sm:$0xff] }
  0x1f   :  { %395 = vst [vmem:[#allocation7 + $0x78] sm:$0xff] %v283_v51  ;;  %v183_v16 = vld [vmem:[#allocation5 + $0xd8] sm:$0xff]  ;;  %v184_v19 = vld [vmem:[#allocation5 + $0xe0] sm:$0xff]  ;;  %v294_v20 = vadd.f32 %v182_v13, %v70_v12  ;;  %v73_v21 = vld [vmem:[#allocation2 + $0xe8] sm:$0xff] }
  0x20   :  { %396 = vst [vmem:[#allocation7 + $0x80] sm:$0xff] %v284_v54  ;;  %v185_v22 = vld [vmem:[#allocation5 + $0xe8] sm:$0xff]  ;;  %v295_v23 = vadd.f32 %v183_v16, %v71_v15  ;;  %v74_v24 = vld [vmem:[#allocation2 + $0xf0] sm:$0xff]  ;;  %v296_v26 = vadd.f32 %v184_v19, %v72_v18  ;;  %v75_v27 = vld [vmem:[#allocation2 + $0xf8] sm:$0xff] }
  0x21   :  { %397 = vst [vmem:[#allocation7 + $0x88] sm:$0xff] %v285_v57  ;;  %v186_v25 = vld [vmem:[#allocation5 + $0xf0] sm:$0xff]  ;;  %v187_v28 = vld [vmem:[#allocation5 + $0xf8] sm:$0xff]  ;;  %v297_v29 = vadd.f32 %v185_v22, %v73_v21  ;;  %v76_v30 = vld [vmem:[#allocation2 + $0x100] sm:$0xff] }
  0x22   :  { %398 = vst [vmem:[#allocation7 + $0x90] sm:$0xff] %v286_v60  ;;  %v188_v31 = vld [vmem:[#allocation5 + $0x100] sm:$0xff]  ;;  %v298_v32 = vadd.f32 %v186_v25, %v74_v24  ;;  %v77_v33 = vld [vmem:[#allocation2 + $0x108] sm:$0xff]  ;;  %v299_v35 = vadd.f32 %v187_v28, %v75_v27  ;;  %v78_v36 = vld [vmem:[#allocation2 + $0x110] sm:$0xff] }
  0x23   :  { %399 = vst [vmem:[#allocation7 + $0x98] sm:$0xff] %v287_v63  ;;  %v189_v34 = vld [vmem:[#allocation5 + $0x108] sm:$0xff]  ;;  %v190_v37 = vld [vmem:[#allocation5 + $0x110] sm:$0xff]  ;;  %v300_v38 = vadd.f32 %v188_v31, %v76_v30  ;;  %v79_v39 = vld [vmem:[#allocation2 + $0x118] sm:$0xff] }
  0x24   :  { %400 = vst [vmem:[#allocation7 + $0xa0] sm:$0xff] %v288_v2  ;;  %v191_v40 = vld [vmem:[#allocation5 + $0x118] sm:$0xff]  ;;  %v301_v41 = vadd.f32 %v189_v34, %v77_v33  ;;  %v80_v42 = vld [vmem:[#allocation2 + $0x120] sm:$0xff]  ;;  %v302_v44 = vadd.f32 %v190_v37, %v78_v36  ;;  %v81_v45 = vld [vmem:[#allocation2 + $0x128] sm:$0xff] }
  0x25   :  { %401 = vst [vmem:[#allocation7 + $0xa8] sm:$0xff] %v289_v5  ;;  %v192_v43 = vld [vmem:[#allocation5 + $0x120] sm:$0xff]  ;;  %v193_v46 = vld [vmem:[#allocation5 + $0x128] sm:$0xff]  ;;  %v303_v47 = vadd.f32 %v191_v40, %v79_v39  ;;  %v82_v48 = vld [vmem:[#allocation2 + $0x130] sm:$0xff] }
  0x26   :  { %402 = vst [vmem:[#allocation7 + $0xb0] sm:$0xff] %v290_v8  ;;  %v194_v49 = vld [vmem:[#allocation5 + $0x130] sm:$0xff]  ;;  %v304_v50 = vadd.f32 %v192_v43, %v80_v42  ;;  %v83_v51 = vld [vmem:[#allocation2 + $0x138] sm:$0xff]  ;;  %v305_v53 = vadd.f32 %v193_v46, %v81_v45  ;;  %v84_v54 = vld [vmem:[#allocation2 + $0x140] sm:$0xff] }
  0x27   :  { %403 = vst [vmem:[#allocation7 + $0xb8] sm:$0xff] %v291_v11  ;;  %v195_v52 = vld [vmem:[#allocation5 + $0x138] sm:$0xff]  ;;  %v196_v55 = vld [vmem:[#allocation5 + $0x140] sm:$0xff]  ;;  %v306_v56 = vadd.f32 %v194_v49, %v82_v48  ;;  %v85_v57 = vld [vmem:[#allocation2 + $0x148] sm:$0xff] }
  0x28   :  { %404 = vst [vmem:[#allocation7 + $0xc0] sm:$0xff] %v292_v14  ;;  %v197_v58 = vld [vmem:[#allocation5 + $0x148] sm:$0xff]  ;;  %v307_v59 = vadd.f32 %v195_v52, %v83_v51  ;;  %v86_v60 = vld [vmem:[#allocation2 + $0x150] sm:$0xff]  ;;  %v308_v62 = vadd.f32 %v196_v55, %v84_v54  ;;  %v87_v63 = vld [vmem:[#allocation2 + $0x158] sm:$0xff] }
  0x29   :  { %405 = vst [vmem:[#allocation7 + $0xc8] sm:$0xff] %v293_v17  ;;  %v198_v61 = vld [vmem:[#allocation5 + $0x150] sm:$0xff]  ;;  %v199_v0 = vld [vmem:[#allocation5 + $0x158] sm:$0xff]  ;;  %v309_v1 = vadd.f32 %v197_v58, %v85_v57  ;;  %v88_v2 = vld [vmem:[#allocation2 + $0x160] sm:$0xff] }
  0x2a   :  { %406 = vst [vmem:[#allocation7 + $0xd0] sm:$0xff] %v294_v20  ;;  %v200_v3 = vld [vmem:[#allocation5 + $0x160] sm:$0xff]  ;;  %v310_v4 = vadd.f32 %v198_v61, %v86_v60  ;;  %v89_v5 = vld [vmem:[#allocation2 + $0x168] sm:$0xff]  ;;  %v311_v7 = vadd.f32 %v199_v0, %v87_v63  ;;  %v90_v8 = vld [vmem:[#allocation2 + $0x170] sm:$0xff] }
  0x2b   :  { %407 = vst [vmem:[#allocation7 + $0xd8] sm:$0xff] %v295_v23  ;;  %v201_v6 = vld [vmem:[#allocation5 + $0x168] sm:$0xff]  ;;  %v202_v9 = vld [vmem:[#allocation5 + $0x170] sm:$0xff]  ;;  %v312_v10 = vadd.f32 %v200_v3, %v88_v2  ;;  %v91_v11 = vld [vmem:[#allocation2 + $0x178] sm:$0xff] }
  0x2c   :  { %408 = vst [vmem:[#allocation7 + $0xe0] sm:$0xff] %v296_v26  ;;  %v203_v12 = vld [vmem:[#allocation5 + $0x178] sm:$0xff]  ;;  %v313_v13 = vadd.f32 %v201_v6, %v89_v5  ;;  %v92_v14 = vld [vmem:[#allocation2 + $0x180] sm:$0xff]  ;;  %v314_v16 = vadd.f32 %v202_v9, %v90_v8  ;;  %v93_v17 = vld [vmem:[#allocation2 + $0x188] sm:$0xff] }
  0x2d   :  { %409 = vst [vmem:[#allocation7 + $0xe8] sm:$0xff] %v297_v29  ;;  %v204_v15 = vld [vmem:[#allocation5 + $0x180] sm:$0xff]  ;;  %v205_v18 = vld [vmem:[#allocation5 + $0x188] sm:$0xff]  ;;  %v315_v19 = vadd.f32 %v203_v12, %v91_v11  ;;  %v94_v20 = vld [vmem:[#allocation2 + $0x190] sm:$0xff] }
  0x2e   :  { %410 = vst [vmem:[#allocation7 + $0xf0] sm:$0xff] %v298_v32  ;;  %v206_v21 = vld [vmem:[#allocation5 + $0x190] sm:$0xff]  ;;  %v316_v22 = vadd.f32 %v204_v15, %v92_v14  ;;  %v95_v23 = vld [vmem:[#allocation2 + $0x198] sm:$0xff]  ;;  %v317_v25 = vadd.f32 %v205_v18, %v93_v17  ;;  %v96_v26 = vld [vmem:[#allocation2 + $0x1a0] sm:$0xff] }
  0x2f   :  { %411 = vst [vmem:[#allocation7 + $0xf8] sm:$0xff] %v299_v35  ;;  %v207_v24 = vld [vmem:[#allocation5 + $0x198] sm:$0xff]  ;;  %v208_v27 = vld [vmem:[#allocation5 + $0x1a0] sm:$0xff]  ;;  %v318_v28 = vadd.f32 %v206_v21, %v94_v20  ;;  %v97_v29 = vld [vmem:[#allocation2 + $0x1a8] sm:$0xff] }
  0x30   :  { %412 = vst [vmem:[#allocation7 + $0x100] sm:$0xff] %v300_v38  ;;  %v209_v30 = vld [vmem:[#allocation5 + $0x1a8] sm:$0xff]  ;;  %v319_v31 = vadd.f32 %v207_v24, %v95_v23  ;;  %v98_v32 = vld [vmem:[#allocation2 + $0x1b0] sm:$0xff]  ;;  %v320_v34 = vadd.f32 %v208_v27, %v96_v26  ;;  %v99_v35 = vld [vmem:[#allocation2 + $0x1b8] sm:$0xff] }
  0x31   :  { %413 = vst [vmem:[#allocation7 + $0x108] sm:$0xff] %v301_v41  ;;  %v210_v33 = vld [vmem:[#allocation5 + $0x1b0] sm:$0xff]  ;;  %v211_v36 = vld [vmem:[#allocation5 + $0x1b8] sm:$0xff]  ;;  %v321_v37 = vadd.f32 %v209_v30, %v97_v29  ;;  %v100_v38 = vld [vmem:[#allocation2 + $0x1c0] sm:$0xff] }
  0x32   :  { %414 = vst [vmem:[#allocation7 + $0x110] sm:$0xff] %v302_v44  ;;  %v212_v39 = vld [vmem:[#allocation5 + $0x1c0] sm:$0xff]  ;;  %v322_v40 = vadd.f32 %v210_v33, %v98_v32  ;;  %v101_v41 = vld [vmem:[#allocation2 + $0x1c8] sm:$0xff]  ;;  %v323_v43 = vadd.f32 %v211_v36, %v99_v35  ;;  %v102_v44 = vld [vmem:[#allocation2 + $0x1d0] sm:$0xff] }
  0x33   :  { %415 = vst [vmem:[#allocation7 + $0x118] sm:$0xff] %v303_v47  ;;  %v213_v42 = vld [vmem:[#allocation5 + $0x1c8] sm:$0xff]  ;;  %v214_v45 = vld [vmem:[#allocation5 + $0x1d0] sm:$0xff]  ;;  %v324_v46 = vadd.f32 %v212_v39, %v100_v38  ;;  %v103_v47 = vld [vmem:[#allocation2 + $0x1d8] sm:$0xff] }
  0x34   :  { %416 = vst [vmem:[#allocation7 + $0x120] sm:$0xff] %v304_v50  ;;  %v215_v48 = vld [vmem:[#allocation5 + $0x1d8] sm:$0xff]  ;;  %v325_v49 = vadd.f32 %v213_v42, %v101_v41  ;;  %v104_v50 = vld [vmem:[#allocation2 + $0x1e0] sm:$0xff]  ;;  %v326_v52 = vadd.f32 %v214_v45, %v102_v44  ;;  %v217_v54 = vld [vmem:[#allocation5 + $0x1e8] sm:$0xff] }
  0x35   :  { %417 = vst [vmem:[#allocation7 + $0x128] sm:$0xff] %v305_v53  ;;  %v216_v51 = vld [vmem:[#allocation5 + $0x1e0] sm:$0xff]  ;;  %v105_v53 = vld [vmem:[#allocation2 + $0x1e8] sm:$0xff]  ;;  %v327_v55 = vadd.f32 %v215_v48, %v103_v47  ;;  %v218_v57 = vld [vmem:[#allocation5 + $0x1f0] sm:$0xff] }
  0x36   :  { %418 = vst [vmem:[#allocation7 + $0x130] sm:$0xff] %v306_v56  ;;  %v106_v56 = vld [vmem:[#allocation2 + $0x1f0] sm:$0xff]  ;;  %v328_v58 = vadd.f32 %v216_v51, %v104_v50  ;;  %v219_v60 = vld [vmem:[#allocation5 + $0x1f8] sm:$0xff]  ;;  %v329_v61 = vadd.f32 %v217_v54, %v105_v53  ;;  %v220_v63 = vld [vmem:[#allocation5 + $0x200] sm:$0xff] }
  0x37   :  { %419 = vst [vmem:[#allocation7 + $0x138] sm:$0xff] %v307_v59  ;;  %v107_v59 = vld [vmem:[#allocation2 + $0x1f8] sm:$0xff]  ;;  %v330_v0 = vadd.f32 %v218_v57, %v106_v56  ;;  %v221_v2 = vld [vmem:[#allocation5 + $0x208] sm:$0xff]  ;;  %v222_v5 = vld [vmem:[#allocation5 + $0x210] sm:$0xff] }
  0x38   :  { %420 = vst [vmem:[#allocation7 + $0x140] sm:$0xff] %v308_v62  ;;  %v108_v62 = vld [vmem:[#allocation2 + $0x200] sm:$0xff]  ;;  %v331_v3 = vadd.f32 %v219_v60, %v107_v59  ;;  %v223_v8 = vld [vmem:[#allocation5 + $0x218] sm:$0xff]  ;;  %v225_v14 = vld [vmem:[#allocation5 + $0x228] sm:$0xff] }
  0x39   :  { %421 = vst [vmem:[#allocation7 + $0x148] sm:$0xff] %v309_v1  ;;  %v109_v1 = vld [vmem:[#allocation2 + $0x208] sm:$0xff]  ;;  %v332_v6 = vadd.f32 %v220_v63, %v108_v62  ;;  %v224_v11 = vld [vmem:[#allocation5 + $0x220] sm:$0xff]  ;;  %v226_v17 = vld [vmem:[#allocation5 + $0x230] sm:$0xff] }
  0x3a   :  { %422 = vst [vmem:[#allocation7 + $0x150] sm:$0xff] %v310_v4  ;;  %v110_v4 = vld [vmem:[#allocation2 + $0x210] sm:$0xff]  ;;  %v333_v9 = vadd.f32 %v221_v2, %v109_v1  ;;  %v227_v20 = vld [vmem:[#allocation5 + $0x238] sm:$0xff]  ;;  %v228_v23 = vld [vmem:[#allocation5 + $0x240] sm:$0xff] }
  0x3b   :  { %423 = vst [vmem:[#allocation7 + $0x158] sm:$0xff] %v311_v7  ;;  %v111_v7 = vld [vmem:[#allocation2 + $0x218] sm:$0xff]  ;;  %v334_v12 = vadd.f32 %v222_v5, %v110_v4  ;;  %v229_v26 = vld [vmem:[#allocation5 + $0x248] sm:$0xff]  ;;  %v230_v29 = vld [vmem:[#allocation5 + $0x250] sm:$0xff] }
  0x3c   :  { %424 = vst [vmem:[#allocation7 + $0x160] sm:$0xff] %v312_v10  ;;  %v112_v10 = vld [vmem:[#allocation2 + $0x220] sm:$0xff]  ;;  %v335_v15 = vadd.f32 %v223_v8, %v111_v7  ;;  %v231_v32 = vld [vmem:[#allocation5 + $0x258] sm:$0xff]  ;;  %v233_v38 = vld [vmem:[#allocation5 + $0x268] sm:$0xff] }
  0x3d   :  { %425 = vst [vmem:[#allocation7 + $0x168] sm:$0xff] %v313_v13  ;;  %v113_v13 = vld [vmem:[#allocation2 + $0x228] sm:$0xff]  ;;  %v336_v18 = vadd.f32 %v224_v11, %v112_v10  ;;  %v232_v35 = vld [vmem:[#allocation5 + $0x260] sm:$0xff]  ;;  %v234_v41 = vld [vmem:[#allocation5 + $0x270] sm:$0xff] }
  0x3e   :  { %426 = vst [vmem:[#allocation7 + $0x170] sm:$0xff] %v314_v16  ;;  %v114_v16 = vld [vmem:[#allocation2 + $0x230] sm:$0xff]  ;;  %v337_v21 = vadd.f32 %v225_v14, %v113_v13  ;;  %v235_v44 = vld [vmem:[#allocation5 + $0x278] sm:$0xff]  ;;  %v236_v47 = vld [vmem:[#allocation5 + $0x280] sm:$0xff] }
  0x3f   :  { %427 = vst [vmem:[#allocation7 + $0x178] sm:$0xff] %v315_v19  ;;  %v115_v19 = vld [vmem:[#allocation2 + $0x238] sm:$0xff]  ;;  %v338_v24 = vadd.f32 %v226_v17, %v114_v16  ;;  %v237_v50 = vld [vmem:[#allocation5 + $0x288] sm:$0xff]  ;;  %v238_v53 = vld [vmem:[#allocation5 + $0x290] sm:$0xff] }
  0x40   :  { %428 = vst [vmem:[#allocation7 + $0x180] sm:$0xff] %v316_v22  ;;  %v116_v22 = vld [vmem:[#allocation2 + $0x240] sm:$0xff]  ;;  %v339_v27 = vadd.f32 %v227_v20, %v115_v19  ;;  %v239_v56 = vld [vmem:[#allocation5 + $0x298] sm:$0xff]  ;;  %v241_v62 = vld [vmem:[#allocation5 + $0x2a8] sm:$0xff] }
  0x41   :  { %429 = vst [vmem:[#allocation7 + $0x188] sm:$0xff] %v317_v25  ;;  %v117_v25 = vld [vmem:[#allocation2 + $0x248] sm:$0xff]  ;;  %v340_v30 = vadd.f32 %v228_v23, %v116_v22  ;;  %v240_v59 = vld [vmem:[#allocation5 + $0x2a0] sm:$0xff]  ;;  %v242_v1 = vld [vmem:[#allocation5 + $0x2b0] sm:$0xff] }
  0x42   :  { %430 = vst [vmem:[#allocation7 + $0x190] sm:$0xff] %v318_v28  ;;  %v118_v28 = vld [vmem:[#allocation2 + $0x250] sm:$0xff]  ;;  %v341_v33 = vadd.f32 %v229_v26, %v117_v25  ;;  %v243_v4 = vld [vmem:[#allocation5 + $0x2b8] sm:$0xff]  ;;  %v244_v7 = vld [vmem:[#allocation5 + $0x2c0] sm:$0xff] }
  0x43   :  { %431 = vst [vmem:[#allocation7 + $0x198] sm:$0xff] %v319_v31  ;;  %v119_v31 = vld [vmem:[#allocation2 + $0x258] sm:$0xff]  ;;  %v342_v36 = vadd.f32 %v230_v29, %v118_v28  ;;  %v245_v10 = vld [vmem:[#allocation5 + $0x2c8] sm:$0xff]  ;;  %v246_v13 = vld [vmem:[#allocation5 + $0x2d0] sm:$0xff] }
  0x44   :  { %432 = vst [vmem:[#allocation7 + $0x1a0] sm:$0xff] %v320_v34  ;;  %v120_v34 = vld [vmem:[#allocation2 + $0x260] sm:$0xff]  ;;  %v343_v39 = vadd.f32 %v231_v32, %v119_v31  ;;  %v247_v16 = vld [vmem:[#allocation5 + $0x2d8] sm:$0xff]  ;;  %v249_v22 = vld [vmem:[#allocation5 + $0x2e8] sm:$0xff] }
  0x45   :  { %433 = vst [vmem:[#allocation7 + $0x1a8] sm:$0xff] %v321_v37  ;;  %v121_v37 = vld [vmem:[#allocation2 + $0x268] sm:$0xff]  ;;  %v344_v42 = vadd.f32 %v232_v35, %v120_v34  ;;  %v248_v19 = vld [vmem:[#allocation5 + $0x2e0] sm:$0xff]  ;;  %v250_v25 = vld [vmem:[#allocation5 + $0x2f0] sm:$0xff] }
  0x46   :  { %434 = vst [vmem:[#allocation7 + $0x1b0] sm:$0xff] %v322_v40  ;;  %v122_v40 = vld [vmem:[#allocation2 + $0x270] sm:$0xff]  ;;  %v345_v45 = vadd.f32 %v233_v38, %v121_v37  ;;  %v251_v28 = vld [vmem:[#allocation5 + $0x2f8] sm:$0xff]  ;;  %v252_v31 = vld [vmem:[#allocation5 + $0x300] sm:$0xff] }
  0x47   :  { %435 = vst [vmem:[#allocation7 + $0x1b8] sm:$0xff] %v323_v43  ;;  %v123_v43 = vld [vmem:[#allocation2 + $0x278] sm:$0xff]  ;;  %v346_v48 = vadd.f32 %v234_v41, %v122_v40  ;;  %v253_v34 = vld [vmem:[#allocation5 + $0x308] sm:$0xff]  ;;  %v254_v37 = vld [vmem:[#allocation5 + $0x310] sm:$0x7f] }
  0x48   :  { %436 = vst [vmem:[#allocation7 + $0x1c0] sm:$0xff] %v324_v46  ;;  %v124_v46 = vld [vmem:[#allocation2 + $0x280] sm:$0xff]  ;;  %v347_v51 = vadd.f32 %v235_v44, %v123_v43  ;;  %v255_v40 = vld [vmem:[#allocation5 + $0x318] sm:$0x7f] }
  0x49   :  { %437 = vst [vmem:[#allocation7 + $0x1c8] sm:$0xff] %v325_v49  ;;  %v125_v49 = vld [vmem:[#allocation2 + $0x288] sm:$0xff]  ;;  %v348_v54 = vadd.f32 %v236_v47, %v124_v46  ;;  %v256_v43 = vld [vmem:[#allocation5 + $0x320] sm:$0x7f] }
  0x4a   :  { %438 = vst [vmem:[#allocation7 + $0x1d0] sm:$0xff] %v326_v52  ;;  %v126_v52 = vld [vmem:[#allocation2 + $0x290] sm:$0xff]  ;;  %v349_v57 = vadd.f32 %v237_v50, %v125_v49  ;;  %v257_v46 = vld [vmem:[#allocation5 + $0x328] sm:$0x7f] }
  0x4b   :  { %439 = vst [vmem:[#allocation7 + $0x1d8] sm:$0xff] %v327_v55  ;;  %v127_v55 = vld [vmem:[#allocation2 + $0x298] sm:$0xff]  ;;  %v350_v60 = vadd.f32 %v238_v53, %v126_v52  ;;  %v258_v49 = vld [vmem:[#allocation5 + $0x330] sm:$0x7f] }
  0x4c   :  { %440 = vst [vmem:[#allocation7 + $0x1e0] sm:$0xff] %v328_v58  ;;  %v128_v58 = vld [vmem:[#allocation2 + $0x2a0] sm:$0xff]  ;;  %v351_v63 = vadd.f32 %v239_v56, %v127_v55  ;;  %v259_v52 = vld [vmem:[#allocation5 + $0x338] sm:$0x7f] }
  0x4d   :  { %441 = vst [vmem:[#allocation7 + $0x1e8] sm:$0xff] %v329_v61  ;;  %v129_v61 = vld [vmem:[#allocation2 + $0x2a8] sm:$0xff]  ;;  %v352_v2 = vadd.f32 %v240_v59, %v128_v58  ;;  %v260_v55 = vld [vmem:[#allocation5 + $0x340] sm:$0x7f] }
  0x4e   :  { %442 = vst [vmem:[#allocation7 + $0x1f0] sm:$0xff] %v330_v0  ;;  %v130_v0 = vld [vmem:[#allocation2 + $0x2b0] sm:$0xff]  ;;  %v353_v5 = vadd.f32 %v241_v62, %v129_v61  ;;  %v261_v58 = vld [vmem:[#allocation5 + $0x348] sm:$0x7f] }
  0x4f   :  { %443 = vst [vmem:[#allocation7 + $0x1f8] sm:$0xff] %v331_v3  ;;  %v131_v3 = vld [vmem:[#allocation2 + $0x2b8] sm:$0xff]  ;;  %v354_v8 = vadd.f32 %v242_v1, %v130_v0  ;;  %v262_v61 = vld [vmem:[#allocation5 + $0x350] sm:$0x7f] }
  0x50   :  { %444 = vst [vmem:[#allocation7 + $0x200] sm:$0xff] %v332_v6  ;;  %v132_v6 = vld [vmem:[#allocation2 + $0x2c0] sm:$0xff]  ;;  %v355_v11 = vadd.f32 %v243_v4, %v131_v3  ;;  %v263_v0 = vld [vmem:[#allocation5 + $0x358] sm:$0x7f] }
  0x51   :  { %445 = vst [vmem:[#allocation7 + $0x208] sm:$0xff] %v333_v9  ;;  %v133_v9 = vld [vmem:[#allocation2 + $0x2c8] sm:$0xff]  ;;  %v356_v14 = vadd.f32 %v244_v7, %v132_v6  ;;  %v264_v3 = vld [vmem:[#allocation5 + $0x360] sm:$0x7f] }
  0x52   :  { %446 = vst [vmem:[#allocation7 + $0x210] sm:$0xff] %v334_v12  ;;  %v134_v12 = vld [vmem:[#allocation2 + $0x2d0] sm:$0xff]  ;;  %v357_v17 = vadd.f32 %v245_v10, %v133_v9  ;;  %v265_v6 = vld [vmem:[#allocation5 + $0x368] sm:$0x7f] }
  0x53   :  { %447 = vst [vmem:[#allocation7 + $0x218] sm:$0xff] %v335_v15  ;;  %v135_v15 = vld [vmem:[#allocation2 + $0x2d8] sm:$0xff]  ;;  %v358_v20 = vadd.f32 %v246_v13, %v134_v12  ;;  %v266_v9 = vld [vmem:[#allocation5 + $0x370] sm:$0x7f] }
  0x54   :  { %448 = vst [vmem:[#allocation7 + $0x220] sm:$0xff] %v336_v18  ;;  %v136_v18 = vld [vmem:[#allocation2 + $0x2e0] sm:$0xff]  ;;  %v359_v23 = vadd.f32 %v247_v16, %v135_v15  ;;  %v267_v12 = vld [vmem:[#allocation5 + $0x378] sm:$0x7f] }
  0x55   :  { %449 = vst [vmem:[#allocation7 + $0x228] sm:$0xff] %v337_v21  ;;  %v137_v21 = vld [vmem:[#allocation2 + $0x2e8] sm:$0xff]  ;;  %v360_v26 = vadd.f32 %v248_v19, %v136_v18 }
  0x56   :  { %450 = vst [vmem:[#allocation7 + $0x230] sm:$0xff] %v338_v24  ;;  %v138_v24 = vld [vmem:[#allocation2 + $0x2f0] sm:$0xff]  ;;  %v361_v29 = vadd.f32 %v249_v22, %v137_v21 }
  0x57   :  { %451 = vst [vmem:[#allocation7 + $0x238] sm:$0xff] %v339_v27  ;;  %v139_v27 = vld [vmem:[#allocation2 + $0x2f8] sm:$0xff]  ;;  %v362_v32 = vadd.f32 %v250_v25, %v138_v24 }
  0x58   :  { %452 = vst [vmem:[#allocation7 + $0x240] sm:$0xff] %v340_v30  ;;  %v140_v30 = vld [vmem:[#allocation2 + $0x300] sm:$0xff]  ;;  %v363_v35 = vadd.f32 %v251_v28, %v139_v27 }
  0x59   :  { %453 = vst [vmem:[#allocation7 + $0x248] sm:$0xff] %v341_v33  ;;  %v141_v33 = vld [vmem:[#allocation2 + $0x308] sm:$0xff]  ;;  %v364_v38 = vadd.f32 %v252_v31, %v140_v30 }
  0x5a   :  { %454 = vst [vmem:[#allocation7 + $0x250] sm:$0xff] %v342_v36  ;;  %v142_v36 = vld [vmem:[#allocation2 + $0x310] sm:$0x7f]  ;;  %v365_v41 = vadd.f32 %v253_v34, %v141_v33 }
  0x5b   :  { %455 = vst [vmem:[#allocation7 + $0x258] sm:$0xff] %v343_v39  ;;  %v143_v39 = vld [vmem:[#allocation2 + $0x318] sm:$0x7f]  ;;  %v366_v44 = vadd.f32 %v254_v37, %v142_v36 }
  0x5c   :  { %456 = vst [vmem:[#allocation7 + $0x260] sm:$0xff] %v344_v42  ;;  %v144_v42 = vld [vmem:[#allocation2 + $0x320] sm:$0x7f]  ;;  %v367_v47 = vadd.f32 %v255_v40, %v143_v39 }
  0x5d   :  { %457 = vst [vmem:[#allocation7 + $0x268] sm:$0xff] %v345_v45  ;;  %v145_v45 = vld [vmem:[#allocation2 + $0x328] sm:$0x7f]  ;;  %v368_v50 = vadd.f32 %v256_v43, %v144_v42 }
  0x5e   :  { %458 = vst [vmem:[#allocation7 + $0x270] sm:$0xff] %v346_v48  ;;  %v146_v48 = vld [vmem:[#allocation2 + $0x330] sm:$0x7f]  ;;  %v369_v53 = vadd.f32 %v257_v46, %v145_v45 }
  0x5f   :  { %459 = vst [vmem:[#allocation7 + $0x278] sm:$0xff] %v347_v51  ;;  %v147_v51 = vld [vmem:[#allocation2 + $0x338] sm:$0x7f]  ;;  %v370_v56 = vadd.f32 %v258_v49, %v146_v48 }
  0x60   :  { %460 = vst [vmem:[#allocation7 + $0x280] sm:$0xff] %v348_v54  ;;  %v148_v54 = vld [vmem:[#allocation2 + $0x340] sm:$0x7f]  ;;  %v371_v59 = vadd.f32 %v259_v52, %v147_v51 }
  0x61   :  { %461 = vst [vmem:[#allocation7 + $0x288] sm:$0xff] %v349_v57  ;;  %v149_v57 = vld [vmem:[#allocation2 + $0x348] sm:$0x7f]  ;;  %v372_v62 = vadd.f32 %v260_v55, %v148_v54 }
  0x62   :  { %462 = vst [vmem:[#allocation7 + $0x290] sm:$0xff] %v350_v60  ;;  %v150_v60 = vld [vmem:[#allocation2 + $0x350] sm:$0x7f]  ;;  %v373_v1 = vadd.f32 %v261_v58, %v149_v57 }
  0x63   :  { %463 = vst [vmem:[#allocation7 + $0x298] sm:$0xff] %v351_v63  ;;  %v151_v63 = vld [vmem:[#allocation2 + $0x358] sm:$0x7f]  ;;  %v374_v4 = vadd.f32 %v262_v61, %v150_v60 }
  0x64   :  { %464 = vst [vmem:[#allocation7 + $0x2a0] sm:$0xff] %v352_v2  ;;  %v152_v2 = vld [vmem:[#allocation2 + $0x360] sm:$0x7f]  ;;  %v375_v7 = vadd.f32 %v263_v0, %v151_v63 }
  0x65   :  { %465 = vst [vmem:[#allocation7 + $0x2a8] sm:$0xff] %v353_v5  ;;  %v153_v5 = vld [vmem:[#allocation2 + $0x368] sm:$0x7f]  ;;  %v376_v10 = vadd.f32 %v264_v3, %v152_v2 }
  0x66   :  { %466 = vst [vmem:[#allocation7 + $0x2b0] sm:$0xff] %v354_v8  ;;  %v154_v8 = vld [vmem:[#allocation2 + $0x370] sm:$0x7f]  ;;  %v377_v13 = vadd.f32 %v265_v6, %v153_v5 }
  0x67   :  { %467 = vst [vmem:[#allocation7 + $0x2b8] sm:$0xff] %v355_v11  ;;  %v155_v11 = vld [vmem:[#allocation2 + $0x378] sm:$0x7f] }
  0x68   :  { %468 = vst [vmem:[#allocation7 + $0x2c0] sm:$0xff] %v356_v14  ;;  %v378_v14 = vadd.f32 %v266_v9, %v154_v8  ;;  %v379_v15 = vadd.f32 %v267_v12, %v155_v11 }
  0x69   :  { %469 = vst [vmem:[#allocation7 + $0x2c8] sm:$0xff] %v357_v17 }
  0x6a   :  { %470 = vst [vmem:[#allocation7 + $0x2d0] sm:$0xff] %v358_v20 }
  0x6b   :  { %471 = vst [vmem:[#allocation7 + $0x2d8] sm:$0xff] %v359_v23 }
  0x6c   :  { %472 = vst [vmem:[#allocation7 + $0x2e0] sm:$0xff] %v360_v26 }
  0x6d   :  { %473 = vst [vmem:[#allocation7 + $0x2e8] sm:$0xff] %v361_v29 }
  0x6e   :  { %474 = vst [vmem:[#allocation7 + $0x2f0] sm:$0xff] %v362_v32 }
  0x6f   :  { %475 = vst [vmem:[#allocation7 + $0x2f8] sm:$0xff] %v363_v35 }
  0x70   :  { %476 = vst [vmem:[#allocation7 + $0x300] sm:$0xff] %v364_v38 }
  0x71   :  { %477 = vst [vmem:[#allocation7 + $0x308] sm:$0xff] %v365_v41 }
  0x72   :  { %478 = vst [vmem:[#allocation7 + $0x310] sm:$0x7f] %v366_v44 }
  0x73   :  { %479 = vst [vmem:[#allocation7 + $0x318] sm:$0x7f] %v367_v47 }
  0x74   :  { %480 = vst [vmem:[#allocation7 + $0x320] sm:$0x7f] %v368_v50 }
  0x75   :  { %481 = vst [vmem:[#allocation7 + $0x328] sm:$0x7f] %v369_v53 }
  0x76   :  { %482 = vst [vmem:[#allocation7 + $0x330] sm:$0x7f] %v370_v56 }
  0x77   :  { %483 = vst [vmem:[#allocation7 + $0x338] sm:$0x7f] %v371_v59 }
  0x78   :  { %484 = vst [vmem:[#allocation7 + $0x340] sm:$0x7f] %v372_v62 }
  0x79   :  { %485 = vst [vmem:[#allocation7 + $0x348] sm:$0x7f] %v373_v1 }
  0x7a   :  { %486 = vst [vmem:[#allocation7 + $0x350] sm:$0x7f] %v374_v4 }
  0x7b   :  { %487 = vst [vmem:[#allocation7 + $0x358] sm:$0x7f] %v375_v7 }
  0x7c   :  { %488 = vst [vmem:[#allocation7 + $0x360] sm:$0x7f] %v376_v10 }
  0x7d   :  { %489 = vst [vmem:[#allocation7 + $0x368] sm:$0x7f] %v377_v13 }
  0x7e   :  { %490 = vst [vmem:[#allocation7 + $0x370] sm:$0x7f] %v378_v14 }
  0x7f   :  { %491 = vst [vmem:[#allocation7 + $0x378] sm:$0x7f] %v379_v15 }
  0x80   :  { %504 = dma.vmem_to_hbm [thread:$0]  %s497_s1, 14336, %s499_s23, [#allocation4], %s596_s17, %s596_s17, %s597_s18  }
  0x81   :  { %593 = dma.done.wait [#allocation4], 14336  }
  0x82   :  { %594 = vsyncadd [#allocation4], 4294952960 }
  0x83   :  { %509 = vsyncpa [#allocation3], 1 }
  0x84   :  { %510 = vsyncpa [#allocation6], 1 }
  0x85   :  { %511 = vsyncpa [#allocation4], 1 }

</bundles_post_ra>
